<compile_context>
chip_gen: v6e
topology: v6e:2x2x1
jax: 0.10.0
libtpu: 0.0.40
codegen_flags: <defaults>
</compile_context>

<pallas_src>
import numpy as np
import jax
import jax.numpy as jnp
from jax.experimental import pallas as pl
from jax.experimental.pallas import tpu as pltpu


def _make_kernel(group_members):
    """group_members: tuple of tuples of static node indices per sibling group."""

    def kernel(x_ref, w_ref, mtw_ref, b_ref, mtb_ref, gsel_ref, gmem_ref, mtg_ref,
               o_ref):
        x = x_ref[...]                                                      # (C, TM)

        # backbone 1x1 conv == per-pixel linear projection, pixels on the lane axis
        logits = jnp.dot(w_ref[...], x,
                         preferred_element_type=jnp.float32) + b_ref[:, 0:1]  # (K, TM)

        # per-sibling-group max (static unroll over the tiny node axis) -> (G, TM)
        # (per-GROUP max, not global row max, so widely-spread logits stay finite)
        rows = []
        for members in group_members:
            r = logits[members[0]:members[0] + 1, :]
            for k in members[1:]:
                r = jnp.maximum(r, logits[k:k + 1, :])
            rows.append(r)
        gmax = jnp.concatenate(rows, axis=0)                                # (G, TM)

        # broadcast each group's max back to its member nodes (one-hot gather, MXU)
        gmax_nodes = jnp.dot(gsel_ref[...], gmax,
                             preferred_element_type=jnp.float32)            # (K, TM)
        e = jnp.exp(logits - gmax_nodes)                                    # (K, TM)
        gsum = jnp.dot(gmem_ref[...], e,
                       preferred_element_type=jnp.float32)                  # (G, TM)
        glse = gmax + jnp.log(gsum)                                         # (G, TM)

        # fused ancestor accumulation (MT folded into the constants on the host):
        #   out = MT @ (logits - Gsel@glse)
        #       = (MT@W) @ x + (MT@b) - (MT@Gsel) @ glse
        out = (jnp.dot(mtw_ref[...], x, preferred_element_type=jnp.float32)
               + mtb_ref[:, 0:1]
               - jnp.dot(mtg_ref[...], glse, preferred_element_type=jnp.float32))
        o_ref[...] = out.astype(o_ref.dtype)

    return kernel


def hierarchical_inference(x, conv_w, conv_b, path_matrix, sibling_mask, n_groups,
                           tile_hw=16384, out_dtype=jnp.float32):
    B, C, H, W = x.shape
    n_nodes = conv_w.shape[0]
    hw = H * W

    # ---- free reshape only: NCHW is already (B, C, H*W) contiguous -------------
    x3 = x.reshape(B, C, hw).astype(jnp.float32)                     # (B, C, HW)

    # ---- lane-dense tile over H*W, balanced so padding is minimal --------------
    tile = max(128, min(int(tile_hw), hw))
    tile = max(128, (tile // 128) * 128)
    n_tiles = pl.cdiv(hw, tile)
    tile = max(128, ((pl.cdiv(hw, n_tiles) + 127) // 128) * 128)
    hw_pad = n_tiles * tile
    if hw_pad != hw:
        # TODO(synk): ragged H*W tail — a masked final tile would avoid this HBM copy;
        # typical H*W is a multiple of 128 so this path is rarely taken.
        x3 = jnp.pad(x3, ((0, 0), (0, 0), (0, hw_pad - hw)))

    # ---- static host-side helper matrices (trace-time constants) ---------------
    pm = np.asarray(path_matrix)
    sm = np.asarray(sibling_mask)
    depth = pm.shape[0]
    group_members = tuple(tuple(int(k) for k in np.nonzero(sm == g)[0])
                          for g in range(n_groups))
    assert all(len(m) > 0 for m in group_members), "every sibling group must be non-empty"

    Gmem = np.zeros((n_groups, n_nodes), np.float32)        # (G, K) membership
    Gmem[sm, np.arange(n_nodes)] = 1.0
    Gsel = np.ascontiguousarray(Gmem.T)                     # (K, G) one-hot gather

    # ancestor matrix: M[j, k] = #times node j appears as (self or) ancestor of k
    # (node index 0 is the "no parent" sentinel, as in the reference).
    M = np.eye(n_nodes, dtype=np.float32)
    for d in range(depth):
        for k in range(n_nodes):
            j = int(pm[d, k])
            if j != 0:
                M[j, k] += 1.0
    MT = np.ascontiguousarray(M.T)                          # (K, K): out^T = MT @ scaled^T

    Wmat = np.asarray(conv_w).reshape(n_nodes, C).astype(np.float32)     # (K, C)
    bvec = np.asarray(conv_b).reshape(n_nodes).astype(np.float32)        # (K,)

    MTW = np.ascontiguousarray(MT @ Wmat)                    # (K, C)
    MTb = MT @ bvec                                          # (K,)
    MTG = np.ascontiguousarray(MT @ Gsel)                    # (K, G)

    # biases pre-broadcast to a full 128-lane tile (no masked partial-lane block)
    b128 = np.ascontiguousarray(np.broadcast_to(bvec[:, None], (n_nodes, 128)))
    mtb128 = np.ascontiguousarray(np.broadcast_to(MTb[:, None], (n_nodes, 128)))

    # ---- VMEM budget: double-buffered I/O blocks + f32 temporaries --------------
    per_lane = 4 * (2 * C + 7 * n_nodes + 3 * n_groups)
    vmem_limit = int(min(64 << 20, max(32 << 20, per_lane * tile + (4 << 20))))

    # ---- advisory cost estimate --------------------------------------------------
    n_pix = B * hw_pad
    out_itemsize = jnp.dtype(out_dtype).itemsize
    flops = int(n_pix * (2 * (2 * n_nodes * C + 3 * n_nodes * n_groups)
                         + 8 * n_nodes))
    cost = pl.CostEstimate(
        flops=flops,
        transcendentals=int(n_pix * (n_nodes + n_groups)),
        bytes_accessed=int(n_pix * (C * 4 + n_nodes * out_itemsize)),
    )

    const = lambda b, i: (0, 0)
    out3 = pl.pallas_call(
        _make_kernel(group_members),
        out_shape=jax.ShapeDtypeStruct((B, n_nodes, hw_pad), out_dtype),
        grid=(B, n_tiles),
        in_specs=[
            pl.BlockSpec((None, C, tile), lambda b, i: (b, 0, i)),   # x[b] slab tile
            pl.BlockSpec((n_nodes, C), const),                       # W
            pl.BlockSpec((n_nodes, C), const),                       # MT @ W
            pl.BlockSpec((n_nodes, 128), const),                     # b (lane-broadcast)
            pl.BlockSpec((n_nodes, 128), const),                     # MT @ b
            pl.BlockSpec((n_nodes, n_groups), const),                # Gsel (gather)
            pl.BlockSpec((n_groups, n_nodes), const),                # Gmem (membership)
            pl.BlockSpec((n_nodes, n_groups), const),                # MT @ Gsel
        ],
        out_specs=pl.BlockSpec((None, n_nodes, tile), lambda b, i: (b, 0, i)),
        compiler_params=pltpu.CompilerParams(
            dimension_semantics=("parallel", "parallel"),
            vmem_limit_bytes=vmem_limit),
        cost_estimate=cost,
    )(x3, jnp.asarray(Wmat), jnp.asarray(MTW), jnp.asarray(b128), jnp.asarray(mtb128),
      jnp.asarray(Gsel), jnp.asarray(Gmem), jnp.asarray(MTG))

    if hw_pad != hw:
        out3 = out3[:, :, :hw]
    return out3.reshape(B, n_nodes, H, W)       # free reshape, no transpose


def reference(x, conv_w, conv_b, path_matrix, sibling_mask, n_groups):
    """Pure-JAX reference following the PyTorch code literally."""
    B, C, H, W = x.shape
    n_nodes = conv_w.shape[0]
    rows = jnp.transpose(x, (0, 2, 3, 1)).reshape(B * H * W, C)
    logits = rows @ conv_w.reshape(n_nodes, C).T + conv_b
    sm = jnp.asarray(np.asarray(sibling_mask))
    onehot = sm[None, :] == jnp.arange(n_groups)[:, None]              # (G, K)
    masked = jnp.where(onehot[None], logits[:, None, :], -jnp.inf)     # (N, G, K)
    lse = jax.scipy.special.logsumexp(masked, axis=-1)                 # (N, G)
    scaled = logits - lse[:, sm]
    marg = scaled
    pm = np.asarray(path_matrix)
    for d in range(pm.shape[0]):
        p = scaled[:, pm[d]]
        p = jnp.where(jnp.asarray(pm[d] == 0)[None, :], 0.0, p)
        marg = marg + p
    return jnp.transpose(marg.reshape(B, H * W, n_nodes), (0, 2, 1)).reshape(
        B, n_nodes, H, W)


if __name__ == "__main__":
    B, C, H, W = 2, 4, 16, 16

    # tree: root 0; level1: 1,2; level2: 3,4 (children of 1), 5,6 (children of 2);
    # level3: 7,8 (of 3), 9,10 (of 4), 11,12 (of 5), 13,14 (of 6)
    n_nodes = 15
    first_parent  = np.array([0, 0, 0, 1, 1, 2, 2, 3, 3, 4, 4, 5, 5, 6, 6], np.int32)
    second_parent = np.array([0, 0, 0, 0, 0, 0, 0, 1, 1, 1, 1, 2, 2, 2, 2], np.int32)
    third_parent  = np.zeros(n_nodes, np.int32)
    path_matrix = np.stack([third_parent, second_parent, first_parent])  # (depth=3, K)
    sibling_mask = np.array([0, 1, 1, 2, 2, 3, 3, 4, 4, 5, 5, 6, 6, 7, 7], np.int32)
    n_groups = 8

    key = jax.random.PRNGKey(0)
    kx, kw, kb = jax.random.split(key, 3)
    x = jax.random.normal(kx, (B, C, H, W), jnp.float32)
    conv_w = 0.1 * jax.random.normal(kw, (n_nodes, C, 1, 1), jnp.float32)  # backbone 1x1 conv
    conv_b = 0.01 * jax.random.normal(kb, (n_nodes,), jnp.float32)

    ref = reference(x, conv_w, conv_b, path_matrix, sibling_mask, n_groups)

    # f32 output path (default)
    out = hierarchical_inference(x, conv_w, conv_b, path_matrix, sibling_mask, n_groups)
    out = jax.block_until_ready(out)
    assert out.shape == (B, n_nodes, H, W)
    np.testing.assert_allclose(np.asarray(out), np.asarray(ref), rtol=1e-4, atol=2e-4)

    # multi-tile grid path (smaller tile -> grid=(B, 2)), same result
    out_mt = hierarchical_inference(x, conv_w, conv_b, path_matrix, sibling_mask,
                                    n_groups, tile_hw=128)
    out_mt = jax.block_until_ready(out_mt)
    np.testing.assert_allclose(np.asarray(out_mt), np.asarray(ref), rtol=1e-4, atol=2e-4)

    # bf16-writeback path (cuts output HBM traffic ~40%; compute stays f32 in-kernel)
    out_bf = hierarchical_inference(x, conv_w, conv_b, path_matrix, sibling_mask,
                                    n_groups, out_dtype=jnp.bfloat16)
    out_bf = jax.block_until_ready(out_bf)
    np.testing.assert_allclose(np.asarray(out_bf.astype(jnp.float32)), np.asarray(ref),
                               rtol=2e-2, atol=5e-2)

    # stress: large logit spread -> per-sibling-group max keeps everything finite
    conv_w_big = 50.0 * conv_w
    out_big = hierarchical_inference(x, conv_w_big, conv_b, path_matrix, sibling_mask,
                                     n_groups)
    out_big = jax.block_until_ready(out_big)
    ref_big = reference(x, conv_w_big, conv_b, path_matrix, sibling_mask, n_groups)
    assert bool(np.isfinite(np.asarray(out_big)).all())
    np.testing.assert_allclose(np.asarray(out_big), np.asarray(ref_big),
                               rtol=1e-3, atol=2e-3)

    print("KERNEL_OK")
</pallas_src>

<mosaic_0001>
module attributes {stable_mosaic.version = 11 : i64} {
  func.func @kernel(%arg0: i32, %arg1: i32, %arg2: memref<1x4x256xf32, #tpu.memory_space<vmem>>, %arg3: memref<15x4xf32, #tpu.memory_space<vmem>>, %arg4: memref<15x4xf32, #tpu.memory_space<vmem>>, %arg5: memref<15x128xf32, #tpu.memory_space<vmem>>, %arg6: memref<15x128xf32, #tpu.memory_space<vmem>>, %arg7: memref<15x8xf32, #tpu.memory_space<vmem>>, %arg8: memref<8x15xf32, #tpu.memory_space<vmem>>, %arg9: memref<15x8xf32, #tpu.memory_space<vmem>>, %arg10: memref<1x15x256xf32, #tpu.memory_space<vmem>>) attributes {dimension_semantics = [#tpu.dimension_semantics<parallel>, #tpu.dimension_semantics<parallel>], iteration_bounds = array<i64: 2, 1>, scalar_prefetch = 0 : i64, scratch_operands = 0 : i64, tpu.core_type = #tpu.core_type<tc>, window_params = [{transform_indices = @transform_0, window_bounds = array<i64: 1, 4, 256>}, {pipeline_mode = #tpu.pipeline_mode<synchronous>, transform_indices = @transform_1, window_bounds = array<i64: 15, 4>}, {pipeline_mode = #tpu.pipeline_mode<synchronous>, transform_indices = @transform_2, window_bounds = array<i64: 15, 4>}, {pipeline_mode = #tpu.pipeline_mode<synchronous>, transform_indices = @transform_3, window_bounds = array<i64: 15, 128>}, {pipeline_mode = #tpu.pipeline_mode<synchronous>, transform_indices = @transform_4, window_bounds = array<i64: 15, 128>}, {pipeline_mode = #tpu.pipeline_mode<synchronous>, transform_indices = @transform_5, window_bounds = array<i64: 15, 8>}, {pipeline_mode = #tpu.pipeline_mode<synchronous>, transform_indices = @transform_6, window_bounds = array<i64: 8, 15>}, {pipeline_mode = #tpu.pipeline_mode<synchronous>, transform_indices = @transform_7, window_bounds = array<i64: 15, 8>}, {transform_indices = @transform_8, window_bounds = array<i64: 1, 15, 256>}]} {
    %c0 = arith.constant 0 : index
    %c0_0 = arith.constant 0 : index
    %c0_1 = arith.constant 0 : index
    %0 = vector.load %arg2[%c0, %c0_0, %c0_1] : memref<1x4x256xf32, #tpu.memory_space<vmem>>, vector<1x4x256xf32>
    %1 = vector.shape_cast %0 : vector<1x4x256xf32> to vector<4x256xf32>
    %c0_2 = arith.constant 0 : index
    %c0_3 = arith.constant 0 : index
    %2 = vector.load %arg3[%c0_2, %c0_3] : memref<15x4xf32, #tpu.memory_space<vmem>>, vector<15x4xf32>
    %cst = arith.constant dense<0.000000e+00> : vector<15x256xf32>
    %3 = tpu.matmul %2, %1, %cst {dimension_numbers = #tpu.dot_dimension_numbers<[1], [0], [0], [1], [0, 0, 1, 1], [], []>} : vector<15x4xf32>, vector<4x256xf32>, vector<15x256xf32> -> vector<15x256xf32>
    %c0_4 = arith.constant 0 : index
    %c0_5 = arith.constant 0 : index
    %4 = vector.load %arg5[%c0_4, %c0_5] : memref<15x128xf32, #tpu.memory_space<vmem>>, vector<15x1xf32>
    %5 = vector.broadcast %4 : vector<15x1xf32> to vector<15x256xf32>
    %6 = arith.addf %3, %5 : vector<15x256xf32>
    %7 = vector.extract_strided_slice %6 {offsets = [0, 0], sizes = [1, 256], strides = [1, 1]} : vector<15x256xf32> to vector<1x256xf32>
    %8 = vector.extract_strided_slice %6 {offsets = [1, 0], sizes = [1, 256], strides = [1, 1]} : vector<15x256xf32> to vector<1x256xf32>
    %9 = vector.extract_strided_slice %6 {offsets = [2, 0], sizes = [1, 256], strides = [1, 1]} : vector<15x256xf32> to vector<1x256xf32>
    %10 = arith.maximumf %8, %9 : vector<1x256xf32>
    %11 = vector.extract_strided_slice %6 {offsets = [3, 0], sizes = [1, 256], strides = [1, 1]} : vector<15x256xf32> to vector<1x256xf32>
    %12 = vector.extract_strided_slice %6 {offsets = [4, 0], sizes = [1, 256], strides = [1, 1]} : vector<15x256xf32> to vector<1x256xf32>
    %13 = arith.maximumf %11, %12 : vector<1x256xf32>
    %14 = vector.extract_strided_slice %6 {offsets = [5, 0], sizes = [1, 256], strides = [1, 1]} : vector<15x256xf32> to vector<1x256xf32>
    %15 = vector.extract_strided_slice %6 {offsets = [6, 0], sizes = [1, 256], strides = [1, 1]} : vector<15x256xf32> to vector<1x256xf32>
    %16 = arith.maximumf %14, %15 : vector<1x256xf32>
    %17 = vector.extract_strided_slice %6 {offsets = [7, 0], sizes = [1, 256], strides = [1, 1]} : vector<15x256xf32> to vector<1x256xf32>
    %18 = vector.extract_strided_slice %6 {offsets = [8, 0], sizes = [1, 256], strides = [1, 1]} : vector<15x256xf32> to vector<1x256xf32>
    %19 = arith.maximumf %17, %18 : vector<1x256xf32>
    %20 = vector.extract_strided_slice %6 {offsets = [9, 0], sizes = [1, 256], strides = [1, 1]} : vector<15x256xf32> to vector<1x256xf32>
    %21 = vector.extract_strided_slice %6 {offsets = [10, 0], sizes = [1, 256], strides = [1, 1]} : vector<15x256xf32> to vector<1x256xf32>
    %22 = arith.maximumf %20, %21 : vector<1x256xf32>
    %23 = vector.extract_strided_slice %6 {offsets = [11, 0], sizes = [1, 256], strides = [1, 1]} : vector<15x256xf32> to vector<1x256xf32>
    %24 = vector.extract_strided_slice %6 {offsets = [12, 0], sizes = [1, 256], strides = [1, 1]} : vector<15x256xf32> to vector<1x256xf32>
    %25 = arith.maximumf %23, %24 : vector<1x256xf32>
    %26 = vector.extract_strided_slice %6 {offsets = [13, 0], sizes = [1, 256], strides = [1, 1]} : vector<15x256xf32> to vector<1x256xf32>
    %27 = vector.extract_strided_slice %6 {offsets = [14, 0], sizes = [1, 256], strides = [1, 1]} : vector<15x256xf32> to vector<1x256xf32>
    %28 = arith.maximumf %26, %27 : vector<1x256xf32>
    %29 = tpu.concatenate %7, %10, %13, %16, %19, %22, %25, %28 in 0 : vector<1x256xf32>, vector<1x256xf32>, vector<1x256xf32>, vector<1x256xf32>, vector<1x256xf32>, vector<1x256xf32>, vector<1x256xf32>, vector<1x256xf32> -> vector<8x256xf32>
    %c0_6 = arith.constant 0 : index
    %c0_7 = arith.constant 0 : index
    %30 = vector.load %arg7[%c0_6, %c0_7] : memref<15x8xf32, #tpu.memory_space<vmem>>, vector<15x8xf32>
    %cst_8 = arith.constant dense<0.000000e+00> : vector<15x256xf32>
    %31 = tpu.matmul %30, %29, %cst_8 {dimension_numbers = #tpu.dot_dimension_numbers<[1], [0], [0], [1], [0, 0, 1, 1], [], []>} : vector<15x8xf32>, vector<8x256xf32>, vector<15x256xf32> -> vector<15x256xf32>
    %32 = arith.subf %6, %31 : vector<15x256xf32>
    %33 = math.exp %32 : vector<15x256xf32>
    %c0_9 = arith.constant 0 : index
    %c0_10 = arith.constant 0 : index
    %34 = vector.load %arg8[%c0_9, %c0_10] : memref<8x15xf32, #tpu.memory_space<vmem>>, vector<8x15xf32>
    %cst_11 = arith.constant dense<0.000000e+00> : vector<8x256xf32>
    %35 = tpu.matmul %34, %33, %cst_11 {dimension_numbers = #tpu.dot_dimension_numbers<[1], [0], [0], [1], [0, 0, 1, 1], [], []>} : vector<8x15xf32>, vector<15x256xf32>, vector<8x256xf32> -> vector<8x256xf32>
    %36 = math.log %35 : vector<8x256xf32>
    %37 = arith.addf %29, %36 : vector<8x256xf32>
    %c0_12 = arith.constant 0 : index
    %c0_13 = arith.constant 0 : index
    %38 = vector.load %arg4[%c0_12, %c0_13] : memref<15x4xf32, #tpu.memory_space<vmem>>, vector<15x4xf32>
    %cst_14 = arith.constant dense<0.000000e+00> : vector<15x256xf32>
    %39 = tpu.matmul %38, %1, %cst_14 {dimension_numbers = #tpu.dot_dimension_numbers<[1], [0], [0], [1], [0, 0, 1, 1], [], []>} : vector<15x4xf32>, vector<4x256xf32>, vector<15x256xf32> -> vector<15x256xf32>
    %c0_15 = arith.constant 0 : index
    %c0_16 = arith.constant 0 : index
    %40 = vector.load %arg6[%c0_15, %c0_16] : memref<15x128xf32, #tpu.memory_space<vmem>>, vector<15x1xf32>
    %41 = vector.broadcast %40 : vector<15x1xf32> to vector<15x256xf32>
    %42 = arith.addf %39, %41 : vector<15x256xf32>
    %c0_17 = arith.constant 0 : index
    %c0_18 = arith.constant 0 : index
    %43 = vector.load %arg9[%c0_17, %c0_18] : memref<15x8xf32, #tpu.memory_space<vmem>>, vector<15x8xf32>
    %cst_19 = arith.constant dense<0.000000e+00> : vector<15x256xf32>
    %44 = tpu.matmul %43, %37, %cst_19 {dimension_numbers = #tpu.dot_dimension_numbers<[1], [0], [0], [1], [0, 0, 1, 1], [], []>} : vector<15x8xf32>, vector<8x256xf32>, vector<15x256xf32> -> vector<15x256xf32>
    %45 = arith.subf %42, %44 : vector<15x256xf32>
    %c0_20 = arith.constant 0 : index
    %c0_21 = arith.constant 0 : index
    %c0_22 = arith.constant 0 : index
    %46 = vector.load %arg10[%c0_20, %c0_21, %c0_22] : memref<1x15x256xf32, #tpu.memory_space<vmem>>, vector<1x15x256xf32>
    %47 = vector.shape_cast %46 : vector<1x15x256xf32> to vector<15x256xf32>
    %48 = vector.shape_cast %45 : vector<15x256xf32> to vector<1x15x256xf32>
    tpu.vector_store %arg10[%c0_20, %c0_21, %c0_22], %48 {strides = array<i32>} : memref<1x15x256xf32, #tpu.memory_space<vmem>>, vector<1x15x256xf32>,
    return
  }
  func.func @transform_0(%arg0: i32, %arg1: i32) -> (i32, i32, i32) {
    %c0_i32 = arith.constant 0 : i32
    %c0_i32_0 = arith.constant 0 : i32
    return %arg0, %c0_i32, %arg1 : i32, i32, i32
  }
  func.func @transform_1(%arg0: i32, %arg1: i32) -> (i32, i32) {
    %c0_i32 = arith.constant 0 : i32
    %c0_i32_0 = arith.constant 0 : i32
    %c0_i32_1 = arith.constant 0 : i32
    return %c0_i32, %c0_i32_0 : i32, i32
  }
  func.func @transform_2(%arg0: i32, %arg1: i32) -> (i32, i32) {
    %c0_i32 = arith.constant 0 : i32
    %c0_i32_0 = arith.constant 0 : i32
    %c0_i32_1 = arith.constant 0 : i32
    return %c0_i32, %c0_i32_0 : i32, i32
  }
  func.func @transform_3(%arg0: i32, %arg1: i32) -> (i32, i32) {
    %c0_i32 = arith.constant 0 : i32
    %c0_i32_0 = arith.constant 0 : i32
    %c0_i32_1 = arith.constant 0 : i32
    return %c0_i32, %c0_i32_0 : i32, i32
  }
  func.func @transform_4(%arg0: i32, %arg1: i32) -> (i32, i32) {
    %c0_i32 = arith.constant 0 : i32
    %c0_i32_0 = arith.constant 0 : i32
    %c0_i32_1 = arith.constant 0 : i32
    return %c0_i32, %c0_i32_0 : i32, i32
  }
  func.func @transform_5(%arg0: i32, %arg1: i32) -> (i32, i32) {
    %c0_i32 = arith.constant 0 : i32
    %c0_i32_0 = arith.constant 0 : i32
    %c0_i32_1 = arith.constant 0 : i32
    return %c0_i32, %c0_i32_0 : i32, i32
  }
  func.func @transform_6(%arg0: i32, %arg1: i32) -> (i32, i32) {
    %c0_i32 = arith.constant 0 : i32
    %c0_i32_0 = arith.constant 0 : i32
    %c0_i32_1 = arith.constant 0 : i32
    return %c0_i32, %c0_i32_0 : i32, i32
  }
  func.func @transform_7(%arg0: i32, %arg1: i32) -> (i32, i32) {
    %c0_i32 = arith.constant 0 : i32
    %c0_i32_0 = arith.constant 0 : i32
    %c0_i32_1 = arith.constant 0 : i32
    return %c0_i32, %c0_i32_0 : i32, i32
  }
  func.func @transform_8(%arg0: i32, %arg1: i32) -> (i32, i32, i32) {
    %c0_i32 = arith.constant 0 : i32
    %c0_i32_0 = arith.constant 0 : i32
    return %arg0, %c0_i32, %arg1 : i32, i32, i32
  }
}

</mosaic_0001>

<bundles_post_ra>
// kernel: tpu_custom_call.1
= control target key start
LH: loop header
LB: loop body
LE: loop exit
PB: predicated region body
PF: predicated region fallthrough
CT: control target
= control target key end

     0   :  { %s1122_s27 = smov 0   ;;  %s1124_s28 = smov 0   ;;  %s1251_s0 = inlined_call_operand.vmem [shape: f32[2,4,256], index: 0, kind: input, shape index: {}]   ;;  %s1252_s1 = inlined_call_operand.vmem [shape: f32[15,4], index: 1, kind: input, shape index: {}]   ;;  %s1253_s2 = inlined_call_operand.vmem [shape: f32[15,4], index: 2, kind: input, shape index: {}]   ;;  %s1254_s3 = inlined_call_operand.vmem [shape: f32[15,128], index: 3, kind: input, shape index: {}]   ;;  %s1255_s4 = inlined_call_operand.vmem [shape: f32[15,128], index: 4, kind: input, shape index: {}]   ;;  %s1256_s5 = inlined_call_operand.vmem [shape: f32[15,8], index: 5, kind: input, shape index: {}]   ;;  %s1257_s6 = inlined_call_operand.vmem [shape: f32[8,15], index: 6, kind: input, shape index: {}]   ;;  %s1258_s7 = inlined_call_operand.vmem [shape: f32[15,8], index: 7, kind: input, shape index: {}]   ;;  %s1259_s8 = inlined_call_operand.vmem [shape: f32[2,15,256], index: 8, kind: output, shape index: {}]  }
   0x1   :  { %s1126_s29 = smov 0  }
   0x2 LB: > { %s30_s30 = sadd.s32 1, %s1069_s28  ;;  %p986_p0 = scmp.ge.s32.totalorder %s1073_s29, 1  ;;  %s1073_s29 = sphi %s1126_s29, %s18_s29   ;;  %s1069_s28 = sphi %s1124_s28, %s1261_s28   ;;  %s1065_s27 = sphi %s1122_s27, %s1260_s27  }
   0x3   : > { %p32_p1 = scmp.ge.s32.totalorder %s30_s30, 2  ;;  %p283_p2 = scmp.lt.s32.totalorder %s1073_s29, 3 }
   0x5   : > { %s1263_s30 = smov (%p32_p1, %s30_s30), 0  ;;  %p284_p3 = pnand %p986_p0, %p283_p2 }
   0x6   : > { %p326_p4 = scmp.lt.s32.totalorder (!%p284_p3), %s1065_s27, 1 }
   0x7   : > { %287 = sbr.rel (%p284_p3) target bundleno = 871 (0x367), region = 52 }
   0xc   : > { %v1075_v0 = vmov 0.0   ;;  %v1076_v1 = vmov 0   ;;  %v348_v2 = vld [vmem:[%s1254_s3] sm:$0xff]  ;;  %s1265_s27 = smov (!%p326_p4, %s1065_s27), 1  ;;  %v349_v3 = vld [vmem:[%s1254_s3 + $0x8] sm:$0x7f] }
   0xd   : > { %438 = vmatprep.mubr.f32.mxu0 %v1075_v0  ;;  %1036 = vset.pattern.permute.xlu0 %v1076_v1  ;;  %s1008_s13 = sshll.u32 %s1265_s27, 3  ;;  %vm369_vm0 = vcmask 1043456   ;;  %v346_v6 = vld [vmem:[%s1252_s1] sm:$0xff]  ;;  %vm362_vm1 = vcmask 31744   ;;  %v347_v7 = vld [vmem:[%s1252_s1 + $0x8] sm:$0x7f] }
   0xe   : > { %352 = vperm.xlu0 %1036, %v348_v2   ;;  %592 = vmatprep.mubr.f32.mxu1 %v1075_v0  ;;  %s333_s16 = scalar_lea.vmem %s1251_s0, %s1008_s13  ;;  %vm499_vm2 = vcmask 1040384   ;;  %vm502_vm3 = vcmask 1041408   ;;  %vm505_vm4 = vcmask 1042432   ;;  %vm510_vm5 = vcmask 1044480   ;;  %v519_v53 = vld [vmem:[%s1256_s5] sm:$0xff]  ;;  %s1009_s21 = sshll.u32 %s1265_s27, 5 }
   0xf   : > { %1037 = vset.pattern.permute.xlu1 %v1076_v1  ;;  %v1154_v4 = vld [vmem:[%s333_s16] sm:$0xff]  ;;  %vm513_vm6 = vcmask 1045504   ;;  %vm516_vm7 = vcmask 1046528   ;;  %vm521_vm8 = vcmask 64512   ;;  %v520_v55 = vld [vmem:[%s1256_s5 + $0x8] sm:$0x7f]  ;;  %s343_s24 = scalar_lea.vmem %s1259_s8, %s1009_s21 }
  0x10   : > { %v1158_v5 = vcombine.high %v1154_v4, %v1154_v4  ;;  %vm618_vm9 = vcmask 121856  }
  0x12   : > { %357 = vperm.xlu0 %1036, %v349_v3   ;;  %991 = vmatprep.subr.msk.mxu0 %vm369_vm0, %v1158_v5 }
  0x13   : > { %992 = vmatpush1.msk.msra.mxu0 %vm369_vm0, %v1154_v4 }
  0x14   : > { %993 = vmatmul.mubr.msk.f32.vlgmr.msra.gmra.mxu0 %vm362_vm1, %v346_v6 }
  0x15   : > { %444 = vmatprep.mubr.f32.mxu0 %v1075_v0 }
  0x18   : > { %994 = vmatmul.mubr.msk.f32.gmra.mxu0 %vm362_vm1, %v347_v7 }
  0x19   : > { %692 = vmatprep.mubr.f32.mxu0 %v1075_v0 }
  0x89   : > { %v353_v8 = vpop.permute.xlu0 %352 }
  0x8d   : > { %v358_v14 = vpop.permute.xlu0 %357 }
  0xd4   : > { %v440_v9 = vpop.f32.mrf.mxu0 }
  0xd5   : > { %v1174_v10 = vadd.f32 %v440_v9, %v353_v8 }
  0xd6   : > { %v442_v11 = vpop.f32.mrf.mxu0 }
  0xd7   : > { %v453_v12 = vrot.slane %v1174_v10, 1  ;;  %v1177_v13 = vadd.f32 %v442_v11, %v353_v8  ;;  %v617_v8 = vld [vmem:[%s1257_s6] sm:$0xff]  ;;  %v706_v11 = vld [vmem:[%s1253_s2 + $0x8] sm:$0x7f] }
  0xd8   : > { %v446_v15 = vpop.f32.mrf.mxu0 }
  0xd9   : > { %v457_v16 = vmax.f32 %v1174_v10, %v453_v12  ;;  %v454_v17 = vrot.slane %v1177_v13, 1  ;;  %v447_v18 = vadd.f32 %v446_v15, %v358_v14  ;;  %v707_v12 = vld [vmem:[%s1255_s4] sm:$0xff] }
  0xda   : > { %v448_v19 = vpop.f32.mrf.mxu0  ;;  %711 = vperm.xlu1 %1037, %v707_v12  }
  0xdb   : > { %v500_v20 = vsel %vm499_vm2, %v1174_v10, %v457_v16  ;;  %v458_v21 = vmax.f32 %v1177_v13, %v454_v17  ;;  %v461_v22 = vrot.slane %v447_v18, 1  ;;  %v449_v23 = vadd.f32 %v448_v19, %v358_v14 }
  0xdc   : > { %v471_v24 = vrot.slane %v457_v16, 1  ;;  %v475_v25 = vrot.slane %v457_v16, 2 }
  0xdd   : > { %v501_v26 = vsel %vm499_vm2, %v1177_v13, %v458_v21  ;;  %v465_v27 = vmax.f32 %v1174_v10, %v461_v22  ;;  %v467_v28 = vmax.f32 %v447_v18, %v461_v22  ;;  %v462_v29 = vrot.slane %v449_v23, 1  ;;  %v802_v22 = vld [vmem:[%s1258_s7] sm:$0xff] }
  0xde   : > { %v472_v30 = vrot.slane %v458_v21, 1  ;;  %v476_v31 = vrot.slane %v458_v21, 2  ;;  %v503_v32 = vsel %vm502_vm3, %v500_v20, %v471_v24 }
  0xdf   : > { %v481_v33 = vrot.slane %v465_v27, 3  ;;  %v466_v34 = vmax.f32 %v1177_v13, %v462_v29  ;;  %v468_v35 = vmax.f32 %v449_v23, %v462_v29  ;;  %v487_v36 = vrot.slane %v467_v28, 4 }
  0xe0   : > { %v504_v37 = vsel %vm502_vm3, %v501_v26, %v472_v30  ;;  %v506_v40 = vsel %vm505_vm4, %v503_v32, %v475_v25  ;;  %v491_v42 = vrot.slane %v467_v28, 5  ;;  %v495_v51 = vrot.slane %v467_v28, 6 }
  0xe1   : > { %v482_v38 = vrot.slane %v466_v34, 3  ;;  %v488_v39 = vrot.slane %v468_v35, 4  ;;  %v507_v41 = vsel %vm505_vm4, %v504_v37, %v476_v31  ;;  %v508_v43 = vsel %vm369_vm0, %v506_v40, %v481_v33 }
  0xe2   : > { %v492_v44 = vrot.slane %v468_v35, 5  ;;  %v511_v46 = vsel %vm510_vm5, %v508_v43, %v487_v36  ;;  %v496_v47 = vrot.slane %v468_v35, 6 }
  0xe3   : > { %v509_v45 = vsel %vm369_vm0, %v507_v41, %v482_v38  ;;  %v514_v49 = vsel %vm513_vm6, %v511_v46, %v491_v42 }
  0xe4   : > { %v512_v48 = vsel %vm510_vm5, %v509_v45, %v488_v39  ;;  %v517_v54 = vsel %vm516_vm7, %v514_v49, %v495_v51 }
  0xe5   : > { %v515_v50 = vsel %vm513_vm6, %v512_v48, %v492_v44 }
  0xe6   : > { %v518_v52 = vsel %vm516_vm7, %v515_v50, %v496_v47 }
  0xe7   : > { %558 = vmatprep.subr.mxu1 %v518_v52 }
  0xe8   : > { %559 = vmatpush1.msra.mxu1 %v517_v54 }
  0xe9   : > { %995 = vmatmul.mubr.msk.f32.vlgmr.msra.gmra.mxu1 %vm521_vm8, %v519_v53  ;;  %1000 = vmatprep.subr.msk.mxu1 %vm369_vm0, %v1158_v5 }
  0xea   : > { %598 = vmatprep.mubr.f32.mxu1 %v1075_v0  ;;  %1001 = vmatpush1.msk.msra.mxu1 %vm369_vm0, %v1154_v4 }
  0xed   : > { %996 = vmatmul.mubr.msk.f32.gmra.mxu1 %vm521_vm8, %v520_v55 }
  0xee   : > { %789 = vmatprep.mubr.f32.mxu1 %v1075_v0 }
 0x155   : > { %v712_v25 = vpop.permute.xlu1 %711 }
 0x1a9   : > { %v594_v56 = vpop.f32.mrf.mxu1 }
 0x1aa   : > { %v605_v61 = vsub.f32 %v1174_v10, %v594_v56  ;;  %v705_v10 = vld [vmem:[%s1253_s2] sm:$0xff] }
 0x1ab   : > { %v596_v57 = vpop.f32.mrf.mxu1  ;;  %1002 = vmatmul.mubr.msk.f32.vlgmr.msra.gmra.mxu1 %vm362_vm1, %v705_v10 }
 0x1ac   : > { %v606_v59 = vsub.f32 %v1177_v13, %v596_v57  ;;  %v609_v5 = vmul.f32 1.442695, %v605_v61  ;;  %795 = vmatprep.mubr.f32.mxu1 %v1075_v0  ;;  %v708_v13 = vld [vmem:[%s1255_s4 + $0x8] sm:$0x7f] }
 0x1ad   : > { %v600_v58 = vpop.f32.mrf.mxu1  ;;  %716 = vperm.xlu1 %1037, %v708_v13  }
 0x1ae   : > { %v607_v60 = vsub.f32 %v447_v18, %v600_v58  ;;  %v611_v2 = vmul.f32 1.442695, %v606_v59 }
 0x1af   : > { %v602_v62 = vpop.f32.mrf.mxu1  ;;  %1003 = vmatmul.mubr.msk.f32.gmra.mxu1 %vm362_vm1, %v706_v11 }
 0x1b0   : > { %v608_v63 = vsub.f32 %v449_v23, %v602_v62  ;;  %v613_v1 = vmul.f32 1.442695, %v607_v60  ;;  %v803_v23 = vld [vmem:[%s1258_s7 + $0x8] sm:$0x7f] }
 0x1b2   : > { %v615_v3 = vmul.f32 1.442695, %v608_v63 }
 0x1b4   : > { %1039 = vpow2.f32 %v615_v3 }
 0x1b5   : > { %1041 = vpow2.f32 %v613_v1 }
 0x1b6   : > { %1043 = vpow2.f32 %v611_v2 }
 0x1b7   : > { %1045 = vpow2.f32 %v609_v5 }
 0x1c1   : > { %v1040_v4 = vpop.eup %1039 }
 0x1c2   : > { %v1042_v6 = vpop.eup %1041  ;;  %997 = vmatprep.subr.msk.mxu0 %vm516_vm7, %v1040_v4 }
 0x1c3   : > { %v1044_v7 = vpop.eup %1043  ;;  %998 = vmatpush1.msk.msra.mxu0 %vm516_vm7, %v1042_v6 }
 0x1c4   : > { %v1046_v9 = vpop.eup %1045  ;;  %658 = vmatprep.subr.mxu0 %v1044_v7 }
 0x1c5   : > { %659 = vmatpush1.msra.mxu0 %v1046_v9 }
 0x1c6   : > { %999 = vmatmul.mubr.msk.f32.vlgmr.msra.gmra.mxu0 %vm618_vm9, %v617_v8 }
 0x1c7   : > { %874 = vmatprep.mubr.f32.mxu0 %v1075_v0 }
 0x228   : > { %v717_v30 = vpop.permute.xlu1 %716 }
 0x26b   : > { %v791_v24 = vpop.f32.mrf.mxu1 }
 0x26c   : > { %v792_v27 = vadd.f32 %v791_v24, %v712_v25 }
 0x26d   : > { %v793_v26 = vpop.f32.mrf.mxu1 }
 0x26e   : > { %v794_v31 = vadd.f32 %v793_v26, %v712_v25 }
 0x26f   : > { %v797_v28 = vpop.f32.mrf.mxu1 }
 0x270   : > { %v798_v35 = vadd.f32 %v797_v28, %v717_v30 }
 0x271   : > { %v799_v33 = vpop.f32.mrf.mxu1 }
 0x272   : > { %v800_v37 = vadd.f32 %v799_v33, %v717_v30 }
 0x286   : > { %v694_v14 = vpop.f32.mrf.mxu0 }
 0x287   : > { %1047 = vlog2.f32 %v694_v14 }
 0x288   : > { %v696_v15 = vpop.f32.mrf.mxu0 }
 0x289   : > { %1049 = vlog2.f32 %v696_v15 }
 0x294   : > { %v1048_v16 = vpop.eup %1047 }
 0x295   : > { %v700_v18 = vmul.f32 0.6931472, %v1048_v16 }
 0x296   : > { %v1050_v17 = vpop.eup %1049 }
 0x297   : > { %v702_v19 = vmul.f32 0.6931472, %v1050_v17  ;;  %v703_v21 = vadd.f32 %v700_v18, %v517_v54 }
 0x299   : > { %v704_v20 = vadd.f32 %v702_v19, %v518_v52 }
 0x29b   : > { %840 = vmatprep.subr.mxu0 %v704_v20 }
 0x29c   : > { %841 = vmatpush1.msra.mxu0 %v703_v21 }
 0x29d   : > { %1004 = vmatmul.mubr.msk.f32.vlgmr.msra.gmra.mxu0 %vm521_vm8, %v802_v22 }
 0x29e   : > { %880 = vmatprep.mubr.f32.mxu0 %v1075_v0 }
 0x2a1   : > { %1005 = vmatmul.mubr.msk.f32.gmra.mxu0 %vm521_vm8, %v803_v23 }
 0x35d   : > { %v876_v29 = vpop.f32.mrf.mxu0 }
 0x35e   : > { %v887_v0 = vsub.f32 %v792_v27, %v876_v29 }
 0x35f   : > { %v878_v32 = vpop.f32.mrf.mxu0 }
 0x360   : > { %891 = vst [vmem:[%s343_s24] sm:$0xff] %v887_v0  ;;  %v888_v34 = vsub.f32 %v794_v31, %v878_v32 }
 0x361   : > { %v882_v36 = vpop.f32.mrf.mxu0 }
 0x362   : > { %892 = vst [vmem:[%s343_s24 + $0x8] sm:$0xff] %v888_v34  ;;  %v889_v38 = vsub.f32 %v798_v35, %v882_v36 }
 0x363   : > { %v884_v39 = vpop.f32.mrf.mxu0 }
 0x364   : > { %893 = vst [vmem:[%s343_s24 + $0x10] sm:$0x7f] %v889_v38  ;;  %v890_v40 = vsub.f32 %v800_v37, %v884_v39 }
 0x366   : > { %894 = vst [vmem:[%s343_s24 + $0x18] sm:$0x7f] %v890_v40 }
 0x367 PF: > { %s18_s29 = sadd.s32 1, %s1073_s29   ;;  %s1260_s27 = smov %s1069_s28 }
 0x368   : > { %p15_p5 = scmp.ge.s32.totalorder %s18_s29, 4   ;;  %s1261_s28 = smov %s1263_s30 }
 0x36a   :  { %17 = sbr.rel (!%p15_p5) target bundleno = 2 (0x2), region = 82 }

</bundles_post_ra>
